<compile_context>
chip_gen: v6e
topology: v6e:2x2x1
jax: 0.10.0
libtpu: 0.0.40
codegen_flags: <defaults>
</compile_context>

<pallas_src>
import jax
import jax.numpy as jnp
from jax.experimental import pallas as pl
from jax.experimental.pallas import tpu as pltpu


def toynet_kernel(x_ref, gw_ref, o_ref):
    """One batch tile: weighted row-reduction.

    x_ref:  (TB, D)  input rows (f32)
    gw_ref: (1, D)   gammas folded into the fc weight (gw = gammas * W)
    o_ref:  (1, TB)  lane-dense output row for this tile
    """
    xw = x_ref[...].astype(jnp.float32) * gw_ref[...].astype(jnp.float32)  # VPU
    row = jnp.sum(xw, axis=-1, keepdims=True)                              # XLU reduce -> (TB, 1)
    o_ref[...] = row.T                                                     # lane-dense (1, TB) store


def _round_up(n, m):
    return ((n + m - 1) // m) * m


def _choose_block_b(b_padded, d, budget_bytes=8 * 1024 * 1024):
    # Size the batch tile so the double-buffered f32 input tile (2 * TB * D * 4 B)
    # stays within `budget_bytes` -- conservative for v5e's 16 MiB scoped default
    # and v7x's 64 MiB physical VMEM.
    tb = (budget_bytes // (2 * d * 4)) // 8 * 8
    tb = max(8, min(tb, 4096))
    return min(tb, b_padded)


def toynet_forward(x, gammas_buf, weight):
    """x: (B, D), gammas_buf: (1, D), weight: (1, D) -> (B,) f32 (0-d scalar if B==1)."""
    B, D = x.shape

    # Fold gammas into the weight once (wrapper-side, tiny (1, D) op).
    gw = gammas_buf.astype(jnp.float32) * weight.astype(jnp.float32)  # (1, D)

    x32 = x.astype(jnp.float32)
    TB = _choose_block_b(_round_up(B, 8), D)
    Bp = _round_up(B, TB)
    if Bp != B:
        x32 = jnp.pad(x32, ((0, Bp - B), (0, 0)))
    num_tiles = Bp // TB

    out = pl.pallas_call(
        toynet_kernel,
        out_shape=jax.ShapeDtypeStruct((num_tiles, TB), jnp.float32),
        grid_spec=pltpu.PrefetchScalarGridSpec(
            num_scalar_prefetch=0,
            grid=(num_tiles,),
            in_specs=[
                pl.BlockSpec((TB, D), lambda i: (i, 0)),   # batch tile of x
                pl.BlockSpec((1, D), lambda i: (0, 0)),    # fused gammas*W (resident)
            ],
            out_specs=pl.BlockSpec((1, TB), lambda i: (i, 0)),  # lane-dense row
        ),
        compiler_params=pltpu.CompilerParams(
            dimension_semantics=("parallel",),             # shard tiles across TCs (v7x)
            vmem_limit_bytes=32 * 1024 * 1024,
        ),
    )(x32, gw)

    y = out.reshape(Bp)[:B]
    if B == 1:
        # torch .squeeze() on a (1, 1) result returns a 0-d scalar.
        return y[0]
    return y


def make_toynet_params(dim, gammas, key):
    """Deterministically build gammas buffer and scaled fc weight."""
    # torch: torch.tensor([gammas[:2] + gammas[2:] * (dim - 2)])  (list concat/repeat)
    g_list = list(gammas[:2]) + list(gammas[2:]) * (dim - 2)
    assert len(g_list) == dim, "gammas construction must yield `dim` entries"
    gammas_buf = jnp.asarray([g_list], dtype=jnp.float32)       # (1, dim)

    # torch Linear default init ~ U(-1/sqrt(dim), 1/sqrt(dim)); then scaled.
    bound = 1.0 / jnp.sqrt(jnp.float32(dim))
    w0 = jax.random.uniform(key, (1, dim), minval=-bound, maxval=bound,
                            dtype=jnp.float32)
    weight = (0.01 / gammas_buf) * w0                           # (1, dim)
    return gammas_buf, weight


if __name__ == "__main__":
    key = jax.random.PRNGKey(0)
    k_x, k_w = jax.random.split(key)

    B, D = 8, 32
    # gammas list of length 3 -> buffer = [g0, g1] + [g2] * (D - 2)
    gammas = [2.0, 0.5, 1.0]

    gammas_buf, weight = make_toynet_params(D, gammas, k_w)
    x = jax.random.normal(k_x, (B, D), dtype=jnp.float32)

    y = toynet_forward(x, gammas_buf, weight)
    y = jax.block_until_ready(y)

    # Pure-JAX reference of the original (unfused) math.
    y_ref = jnp.squeeze((x * gammas_buf).astype(jnp.float32) @ weight.T, axis=-1)
    assert y.shape == (B,)
    assert jnp.allclose(y, y_ref, atol=1e-5, rtol=1e-5)

    print("KERNEL_OK")
</pallas_src>

<mosaic_0001>
module attributes {stable_mosaic.version = 11 : i64} {
  func.func @toynet_kernel(%arg0: i32, %arg1: memref<8x32xf32, #tpu.memory_space<vmem>>, %arg2: memref<1x32xf32, #tpu.memory_space<vmem>>, %arg3: memref<1x8xf32, #tpu.memory_space<vmem>>) attributes {dimension_semantics = [#tpu.dimension_semantics<parallel>], iteration_bounds = array<i64: 1>, scalar_prefetch = 0 : i64, scratch_operands = 0 : i64, tpu.core_type = #tpu.core_type<tc>, window_params = [{transform_indices = @transform_0, window_bounds = array<i64: 8, 32>}, {pipeline_mode = #tpu.pipeline_mode<synchronous>, transform_indices = @transform_1, window_bounds = array<i64: 1, 32>}, {transform_indices = @transform_2, window_bounds = array<i64: 1, 8>}]} {
    %c0 = arith.constant 0 : index
    %c0_0 = arith.constant 0 : index
    %0 = vector.load %arg1[%c0, %c0_0] : memref<8x32xf32, #tpu.memory_space<vmem>>, vector<8x32xf32>
    %c0_1 = arith.constant 0 : index
    %c0_2 = arith.constant 0 : index
    %1 = vector.load %arg2[%c0_1, %c0_2] : memref<1x32xf32, #tpu.memory_space<vmem>>, vector<1x32xf32>
    %2 = vector.broadcast %1 : vector<1x32xf32> to vector<8x32xf32>
    %3 = arith.mulf %0, %2 : vector<8x32xf32>
    %cst = arith.constant dense<0.000000e+00> : vector<8xf32>
    %4 = vector.multi_reduction <add>, %3, %cst [1] : vector<8x32xf32> to vector<8xf32>
    %5 = vector.shape_cast %4 : vector<8xf32> to vector<8x1xf32>
    %6 = tpu.transpose %5, [1, 0] : vector<8x1xf32> -> vector<1x8xf32>
    %c0_3 = arith.constant 0 : index
    %c0_4 = arith.constant 0 : index
    %7 = vector.load %arg3[%c0_3, %c0_4] : memref<1x8xf32, #tpu.memory_space<vmem>>, vector<1x8xf32>
    tpu.vector_store %arg3[%c0_3, %c0_4], %6 {strides = array<i32>} : memref<1x8xf32, #tpu.memory_space<vmem>>, vector<1x8xf32>,
    return
  }
  func.func @transform_0(%arg0: i32) -> (i32, i32) {
    %c0_i32 = arith.constant 0 : i32
    %c0_i32_0 = arith.constant 0 : i32
    return %arg0, %c0_i32 : i32, i32
  }
  func.func @transform_1(%arg0: i32) -> (i32, i32) {
    %c0_i32 = arith.constant 0 : i32
    %c0_i32_0 = arith.constant 0 : i32
    %c0_i32_1 = arith.constant 0 : i32
    return %c0_i32, %c0_i32_0 : i32, i32
  }
  func.func @transform_2(%arg0: i32) -> (i32, i32) {
    %c0_i32 = arith.constant 0 : i32
    %c0_i32_0 = arith.constant 0 : i32
    return %arg0, %c0_i32 : i32, i32
  }
}

</mosaic_0001>

<bundles_post_ra>
// kernel: tpu_custom_call.1
= control target key start
LH: loop header
LB: loop body
LE: loop exit
PB: predicated region body
PF: predicated region fallthrough
CT: control target
= control target key end

     0   :  { %7 = vsyncpa [#allocation3], 0  ;;  %s160_s0 = inlined_call_operand.hbm [shape: f32[8,32], index: 0, kind: input, shape index: {}]   ;;  %s161_s1 = inlined_call_operand.vmem [shape: f32[1,32], index: 1, kind: input, shape index: {}]   ;;  %s162_s2 = inlined_call_operand.hbm [shape: f32[1,8], index: 2, kind: output, shape index: {}]  }
   0x1   :  { %8 = vsyncpa [#allocation4], 0  ;;  %s134_s9 = smov [#allocation2]  }
   0x2   :  { %s15_s10 = sshll.u32 %s134_s9, 4  ;;  %s16_s10 = int_to_ptr.vmem [resolvable:$true] %s15_s10 }
   0x3   :  { %s98_s11 = scalar_lea.vmem %s16_s10, 128  ;;  %p103_p1 = scmp.lt.s32.totalorder %s16_s10, %s16_s10 }
   0x4   :  { %p99_p0 = scmp.ne.s32.totalorder %s16_s10, %s98_s11  ;;  %p104_p2 = scmp.lt.s32.totalorder %s98_s11, %s98_s11 }
   0x6   :  { %p105_p3 = por %p104_p2, %p103_p1 }
   0x8   :  { %p106_p4 = pnand %p105_p3, %p99_p0 }
   0xa   :  { %109 = shalt.err (!%p106_p4)
}
   0xb   :  { %18 = dma.hbm_to_vmem [thread:$0]  %s160_s0, 128, %s16_s10, [#allocation3]  }
   0xc   :  { %130 = dma.done.wait [#allocation3], 128  }
   0xd   :  { %131 = vsyncadd [#allocation3], 4294967168  ;;  %v24_v0 = vld [vmem:[#allocation2] sm:$0xff]  ;;  %vm33_vm0 = vcmask 261120   ;;  %s135_s16 = smov [#allocation5]   ;;  %vm69_vm1 = vcmask 57344  }
   0xe   :  { %v86_v1 = vld [vmem:[%s161_s1] ss:$0 sm:$0xff]  ;;  %s77_s17 = sshll.u32 %s135_s16, 4  ;;  %s78_s17 = int_to_ptr.vmem [resolvable:$true] %s77_s17 }
   0xf   :  { %v32_v2 = vmul.f32 %v86_v1, %v24_v0  ;;  %s110_s0 = scalar_lea.vmem %s78_s17, 16  ;;  %s114_s18 = scalar_lea.vmem %s78_s17, 32 }
  0x10   :  { %p111_p5 = scmp.ne.s32.totalorder %s78_s17, %s110_s0  ;;  %p115_p6 = scmp.lt.s32.totalorder %s78_s17, %s78_s17 }
  0x11   :  { %v34_v3 = vsel %vm33_vm0, %v32_v2, 0.0  ;;  %p116_p7 = scmp.lt.s32.totalorder %s114_s18, %s110_s0 }
  0x12   :  { %35 = vadd.xlane.f32.xlu0 %v34_v3 }
  0x13   :  { %p117_p8 = por %p116_p7, %p115_p6 }
  0x15   :  { %p118_p9 = pnand %p117_p8, %p111_p5 }
  0x9b   :  { %v36_v4 = vpop.xlane.xlu0 %35 }
  0x9c   :  { %37 = vxpose.xlu0.b32.start.end [1/1] (short) (narrow) %v36_v4, 8 }
 0x118   :  { %v53_v5 = vpop.trf.xlu0 }
 0x119   :  { %70 = vst.msk [vmem:[#allocation5] sm:$0x1] %vm69_vm1, %v53_v5 }
 0x11a   :  { %121 = shalt.err (!%p118_p9)
}
 0x11b   :  { %80 = dma.vmem_to_hbm [thread:$0]  %s78_s17, 16, %s162_s2, [#allocation4]  }
 0x11c   :  { %132 = dma.done.wait [#allocation4], 16  }
 0x11d   :  { %133 = vsyncadd [#allocation4], 4294967280 }
 0x11e   :  { %84 = vsyncpa [#allocation3], 1 }
 0x11f   :  { %85 = vsyncpa [#allocation4], 1 }

</bundles_post_ra>
